<compile_context>
chip_gen: v7x
topology: tpu7x:2x2x1
jax: 0.10.0
libtpu: 0.0.40
codegen_flags: <defaults>
</compile_context>

<pallas_src>
import functools

import jax
import jax.numpy as jnp
from jax.experimental import pallas as pl
from jax.experimental.pallas import tpu as pltpu


def lstm_kernel(xh_ref, c0_ref, w_gates_ref, b_gates_ref,
                w_head_ref, b_head_ref, out_ref, *,
                hidden_dim, action_dim):
    H = hidden_dim
    A = action_dim

    xh = xh_ref[...]            # (B, D_in + H)  f32
    c0 = c0_ref[...]            # (1, H)         f32, broadcast over batch

    # --- single fused gate matmul -> (B, 4H), gate order [i, f, c, o] ---------------
    g = jnp.dot(xh, w_gates_ref[...],
                preferred_element_type=jnp.float32) + b_gates_ref[...]

    # --- full-width nonlinearities (EUP), then cheap lane slices ---------------------
    # sigmoid(z) == 0.5 * (tanh(z/2) + 1)  -> EUP tanh, no VPU divide.
    sig_g = 0.5 * (jnp.tanh(0.5 * g) + 1.0)
    tanh_g = jnp.tanh(g)

    i_gate = sig_g[:, 0 * H:1 * H]
    f_gate = sig_g[:, 1 * H:2 * H]
    c_tilde = tanh_g[:, 2 * H:3 * H]
    o_gate = sig_g[:, 3 * H:4 * H]

    c_new = f_gate * c0 + i_gate * c_tilde          # (B, H)
    h_new = o_gate * jnp.tanh(c_new)                # (B, H)

    # --- fused policy/value head: cols [0..A-1] = policy logits, col A = value, rest 0-pad
    hv = jnp.dot(h_new, w_head_ref[...],
                 preferred_element_type=jnp.float32) + b_head_ref[...]   # (B, P=128)

    B, P = hv.shape
    col = jax.lax.broadcasted_iota(jnp.int32, (B, P), 1)

    # Softmax over the A real logit lanes only (value/padding lanes masked to -inf -> exp == 0).
    masked_logits = jnp.where(col < A, hv, -jnp.inf)
    m = jnp.max(masked_logits, axis=-1, keepdims=True)
    e = jnp.exp(masked_logits - m)
    denom = jnp.sum(e, axis=-1, keepdims=True)
    probs_full = e * pl.reciprocal(denom, approx=False)

    # Lane-dense output slab: [ probs (A lanes) | v (1 lane) | zeros ].
    out = jnp.where(col == A, hv, probs_full)
    out_ref[...] = out.astype(out_ref.dtype)


def lstm_forward(x, h0, c0, w_gates, b_gates, w_head, b_head, *,
                 hidden_dim, action_dim):
    B = x.shape[0]
    P = w_head.shape[1]

    # Layout plumbing: fuse the x / h operands so the kernel does one gate matmul.
    xh = jnp.concatenate(
        [x, jnp.broadcast_to(h0, (B, hidden_dim))], axis=1).astype(jnp.float32)

    D = xh.shape[1]
    H4 = w_gates.shape[1]
    flops = 2 * B * D * H4 + 2 * B * hidden_dim * P
    transcendentals = B * (2 * H4 + hidden_dim + P)
    bytes_accessed = 4 * (xh.size + c0.size + w_gates.size + b_gates.size
                          + w_head.size + b_head.size + B * P)

    vmem = pl.BlockSpec(memory_space=pltpu.MemorySpace.VMEM)
    kernel = functools.partial(lstm_kernel,
                               hidden_dim=hidden_dim, action_dim=action_dim)
    out = pl.pallas_call(
        kernel,
        out_shape=jax.ShapeDtypeStruct((B, P), jnp.float32),
        in_specs=[vmem] * 6,
        out_specs=vmem,
        cost_estimate=pl.CostEstimate(flops=int(flops),
                                      transcendentals=int(transcendentals),
                                      bytes_accessed=int(bytes_accessed)),
    )(xh, c0, w_gates, b_gates, w_head, b_head)

    probs = out[:, :action_dim]
    v = out[:, action_dim:action_dim + 1]
    return probs, v


def init_params(key, state_dim, action_dim, hidden_dim):
    """PyTorch-style uniform(-1/sqrt(fan_in), 1/sqrt(fan_in)) init.
    Weights created already transposed to (in, out)."""
    input_dim = state_dim + action_dim + 1
    keys = jax.random.split(key, 16)

    def u(k, shape, fan_in):
        b = 1.0 / jnp.sqrt(fan_in)
        return jax.random.uniform(k, shape, jnp.float32, -b, b)

    # x -> gate weights (no bias), order [i, f, c, o]
    wxs = [u(keys[j], (input_dim, hidden_dim), input_dim) for j in range(4)]
    # h -> gate weights (+ bias)
    whs = [u(keys[4 + j], (hidden_dim, hidden_dim), hidden_dim) for j in range(4)]
    bhs = [u(keys[8 + j], (1, hidden_dim), hidden_dim) for j in range(4)]

    wx = jnp.concatenate(wxs, axis=1)          # (D_in, 4H)
    wh = jnp.concatenate(whs, axis=1)          # (H, 4H)
    bh = jnp.concatenate(bhs, axis=1)          # (1, 4H)

    wa = u(keys[12], (hidden_dim, action_dim), hidden_dim)
    ba = u(keys[13], (1, action_dim), hidden_dim)
    wv = u(keys[14], (hidden_dim, 1), hidden_dim)
    bv = u(keys[15], (1, 1), hidden_dim)
    return wx, wh, bh, wa, ba, wv, bv


def fuse_params(wx, wh, bh, wa, ba, wv, bv, *, head_pad=128):
    """One-time parameter re-layout for the fused kernel."""
    w_gates = jnp.concatenate([wx, wh], axis=0)                 # (D_in + H, 4H)
    b_gates = bh                                                # (1, 4H)
    H, A = wa.shape
    pad = head_pad - (A + 1)
    w_head = jnp.concatenate(
        [wa, wv, jnp.zeros((H, pad), jnp.float32)], axis=1)     # (H, 128)
    b_head = jnp.concatenate(
        [ba, bv, jnp.zeros((1, pad), jnp.float32)], axis=1)     # (1, 128)
    return w_gates, b_gates, w_head, b_head


def reference_forward(x, h0, c0, wx, wh, bh, wa, ba, wv, bv, hidden_dim):
    H = hidden_dim
    g = x @ wx + (h0 @ wh + bh)
    i = jax.nn.sigmoid(g[:, 0 * H:1 * H])
    f = jax.nn.sigmoid(g[:, 1 * H:2 * H])
    ct = jnp.tanh(g[:, 2 * H:3 * H])
    o = jax.nn.sigmoid(g[:, 3 * H:4 * H])
    c = f * c0 + i * ct
    h = o * jnp.tanh(c)
    probs = jax.nn.softmax(h @ wa + ba, axis=1)
    v = h @ wv + bv
    return probs, v


if __name__ == "__main__":
    batch = 2
    state_dim = 4
    action_dim = 4
    hidden_dim = 32

    key = jax.random.PRNGKey(0)
    k_s, k_a, k_r, k_p = jax.random.split(key, 4)

    s = jax.random.normal(k_s, (batch, state_dim), jnp.float32)
    a_prev = jax.random.normal(k_a, (batch, action_dim), jnp.float32)
    r_prev = jax.random.normal(k_r, (batch, 1), jnp.float32)

    # x = cat((s, a_prev, r_prev), dim=1) -- glue in plain JAX
    x = jnp.concatenate([s.reshape(-1, state_dim),
                         a_prev.reshape(-1, action_dim),
                         r_prev.reshape(-1, 1)], axis=1)

    # Module state h, c start at zeros (shape (H,), broadcast over batch).
    h0 = jnp.zeros((1, hidden_dim), jnp.float32)
    c0 = jnp.zeros((1, hidden_dim), jnp.float32)

    wx, wh, bh, wa, ba, wv, bv = init_params(k_p, state_dim, action_dim, hidden_dim)
    w_gates, b_gates, w_head, b_head = fuse_params(wx, wh, bh, wa, ba, wv, bv)

    probs, v = lstm_forward(x, h0, c0, w_gates, b_gates, w_head, b_head,
                            hidden_dim=hidden_dim, action_dim=action_dim)
    jax.block_until_ready((probs, v))

    # Correctness check against a plain-JAX reference on the ORIGINAL (unfused) params.
    probs_ref, v_ref = reference_forward(x, h0, c0, wx, wh, bh, wa, ba, wv, bv,
                                         hidden_dim)
    assert probs.shape == (batch, action_dim) and v.shape == (batch, 1)
    assert jnp.allclose(probs, probs_ref, atol=1e-5, rtol=1e-5)
    assert jnp.allclose(v, v_ref, atol=1e-5, rtol=1e-5)

    print("KERNEL_OK")
</pallas_src>

<mosaic_0001>
module attributes {stable_mosaic.version = 11 : i64} {
  func.func @lstm_kernel(%arg0: memref<2x41xf32, #tpu.memory_space<vmem>>, %arg1: memref<1x32xf32, #tpu.memory_space<vmem>>, %arg2: memref<41x128xf32, #tpu.memory_space<vmem>>, %arg3: memref<1x128xf32, #tpu.memory_space<vmem>>, %arg4: memref<32x128xf32, #tpu.memory_space<vmem>>, %arg5: memref<1x128xf32, #tpu.memory_space<vmem>>, %arg6: memref<2x128xf32, #tpu.memory_space<vmem>>) attributes {dimension_semantics = [], scalar_prefetch = 0 : i64, scratch_operands = 0 : i64, tpu.core_type = #tpu.core_type<tc>} {
    %c0 = arith.constant 0 : index
    %c0_0 = arith.constant 0 : index
    %0 = vector.load %arg0[%c0, %c0_0] : memref<2x41xf32, #tpu.memory_space<vmem>>, vector<2x41xf32>
    %c0_1 = arith.constant 0 : index
    %c0_2 = arith.constant 0 : index
    %1 = vector.load %arg1[%c0_1, %c0_2] : memref<1x32xf32, #tpu.memory_space<vmem>>, vector<1x32xf32>
    %c0_3 = arith.constant 0 : index
    %c0_4 = arith.constant 0 : index
    %2 = vector.load %arg2[%c0_3, %c0_4] : memref<41x128xf32, #tpu.memory_space<vmem>>, vector<41x128xf32>
    %cst = arith.constant dense<0.000000e+00> : vector<2x128xf32>
    %3 = tpu.matmul %0, %2, %cst {dimension_numbers = #tpu.dot_dimension_numbers<[1], [0], [0], [1], [0, 0, 1, 1], [], []>} : vector<2x41xf32>, vector<41x128xf32>, vector<2x128xf32> -> vector<2x128xf32>
    %c0_5 = arith.constant 0 : index
    %c0_6 = arith.constant 0 : index
    %4 = vector.load %arg3[%c0_5, %c0_6] : memref<1x128xf32, #tpu.memory_space<vmem>>, vector<1x128xf32>
    %5 = vector.broadcast %4 : vector<1x128xf32> to vector<2x128xf32>
    %6 = arith.addf %3, %5 : vector<2x128xf32>
    %cst_7 = arith.constant 5.000000e-01 : f32
    %7 = vector.broadcast %cst_7 : f32 to vector<2x128xf32>
    %8 = arith.mulf %7, %6 : vector<2x128xf32>
    %9 = math.tanh %8 : vector<2x128xf32>
    %cst_8 = arith.constant 1.000000e+00 : f32
    %10 = vector.broadcast %cst_8 : f32 to vector<2x128xf32>
    %11 = arith.addf %9, %10 : vector<2x128xf32>
    %cst_9 = arith.constant 5.000000e-01 : f32
    %12 = vector.broadcast %cst_9 : f32 to vector<2x128xf32>
    %13 = arith.mulf %12, %11 : vector<2x128xf32>
    %14 = math.tanh %6 : vector<2x128xf32>
    %15 = vector.extract_strided_slice %13 {offsets = [0, 0], sizes = [2, 32], strides = [1, 1]} : vector<2x128xf32> to vector<2x32xf32>
    %16 = vector.extract_strided_slice %13 {offsets = [0, 32], sizes = [2, 32], strides = [1, 1]} : vector<2x128xf32> to vector<2x32xf32>
    %17 = vector.extract_strided_slice %14 {offsets = [0, 64], sizes = [2, 32], strides = [1, 1]} : vector<2x128xf32> to vector<2x32xf32>
    %18 = vector.extract_strided_slice %13 {offsets = [0, 96], sizes = [2, 32], strides = [1, 1]} : vector<2x128xf32> to vector<2x32xf32>
    %19 = vector.broadcast %1 : vector<1x32xf32> to vector<2x32xf32>
    %20 = arith.mulf %16, %19 : vector<2x32xf32>
    %21 = arith.mulf %15, %17 : vector<2x32xf32>
    %22 = arith.addf %20, %21 : vector<2x32xf32>
    %23 = math.tanh %22 : vector<2x32xf32>
    %24 = arith.mulf %18, %23 : vector<2x32xf32>
    %c0_10 = arith.constant 0 : index
    %c0_11 = arith.constant 0 : index
    %25 = vector.load %arg4[%c0_10, %c0_11] : memref<32x128xf32, #tpu.memory_space<vmem>>, vector<32x128xf32>
    %cst_12 = arith.constant dense<0.000000e+00> : vector<2x128xf32>
    %26 = tpu.matmul %24, %25, %cst_12 {dimension_numbers = #tpu.dot_dimension_numbers<[1], [0], [0], [1], [0, 0, 1, 1], [], []>} : vector<2x32xf32>, vector<32x128xf32>, vector<2x128xf32> -> vector<2x128xf32>
    %c0_13 = arith.constant 0 : index
    %c0_14 = arith.constant 0 : index
    %27 = vector.load %arg5[%c0_13, %c0_14] : memref<1x128xf32, #tpu.memory_space<vmem>>, vector<1x128xf32>
    %28 = vector.broadcast %27 : vector<1x128xf32> to vector<2x128xf32>
    %29 = arith.addf %26, %28 : vector<2x128xf32>
    %30 = tpu.iota {dimensions = array<i32: 1>} : vector<2x128xi32>
    %c4_i32 = arith.constant 4 : i32
    %31 = vector.broadcast %c4_i32 : i32 to vector<2x128xi32>
    %32 = arith.cmpi slt, %30, %31 : vector<2x128xi32>
    %cst_15 = arith.constant 0xFF800000 : f32
    %33 = vector.broadcast %cst_15 : f32 to vector<2x128xf32>
    %34 = arith.select %32, %29, %33 : vector<2x128xi1>, vector<2x128xf32>
    %cst_16 = arith.constant dense<0xFF800000> : vector<2xf32>
    %35 = vector.multi_reduction <maximumf>, %34, %cst_16 [1] : vector<2x128xf32> to vector<2xf32>
    %36 = vector.shape_cast %35 : vector<2xf32> to vector<2x1xf32>
    %37 = vector.broadcast %36 : vector<2x1xf32> to vector<2x128xf32>
    %38 = arith.subf %34, %37 : vector<2x128xf32>
    %39 = math.exp %38 : vector<2x128xf32>
    %cst_17 = arith.constant dense<0.000000e+00> : vector<2xf32>
    %40 = vector.multi_reduction <add>, %39, %cst_17 [1] : vector<2x128xf32> to vector<2xf32>
    %41 = vector.shape_cast %40 : vector<2xf32> to vector<2x1xf32>
    %42 = tpu.reciprocal %41 : vector<2x1xf32> -> vector<2x1xf32>
    %43 = vector.broadcast %42 : vector<2x1xf32> to vector<2x128xf32>
    %44 = arith.mulf %39, %43 : vector<2x128xf32>
    %c4_i32_18 = arith.constant 4 : i32
    %45 = vector.broadcast %c4_i32_18 : i32 to vector<2x128xi32>
    %46 = arith.cmpi eq, %30, %45 : vector<2x128xi32>
    %47 = arith.select %46, %29, %44 : vector<2x128xi1>, vector<2x128xf32>
    %c0_19 = arith.constant 0 : index
    %c0_20 = arith.constant 0 : index
    %48 = vector.load %arg6[%c0_19, %c0_20] : memref<2x128xf32, #tpu.memory_space<vmem>>, vector<2x128xf32>
    tpu.vector_store %arg6[%c0_19, %c0_20], %47 {strides = array<i32>} : memref<2x128xf32, #tpu.memory_space<vmem>>, vector<2x128xf32>,
    return
  }
}

</mosaic_0001>

<bundles_post_ra>
// kernel: tpu_custom_call.1
= control target key start
LH: loop header
LB: loop body
LE: loop exit
PB: predicated region body
PF: predicated region fallthrough
CT: control target
= control target key end

     0   :  { %11 = vsyncpa [#allocation3], 0  ;;  %s594_s0 = inlined_call_operand.hbm [shape: f32[2,41], index: 0, kind: input, shape index: {}]   ;;  %s595_s1 = inlined_call_operand.vmem [shape: f32[1,32], index: 1, kind: input, shape index: {}]   ;;  %s596_s2 = inlined_call_operand.hbm [shape: f32[41,128], index: 2, kind: input, shape index: {}]   ;;  %s597_s3 = inlined_call_operand.vmem [shape: f32[1,128], index: 3, kind: input, shape index: {}]   ;;  %s598_s4 = inlined_call_operand.hbm [shape: f32[32,128], index: 4, kind: input, shape index: {}]   ;;  %s599_s5 = inlined_call_operand.vmem [shape: f32[1,128], index: 5, kind: input, shape index: {}]   ;;  %s600_s6 = inlined_call_operand.hbm [shape: f32[2,128], index: 6, kind: output, shape index: {}]  }
   0x1   :  { %12 = vsyncpa [#allocation6], 0 }
   0x2   :  { %13 = vsyncpa [#allocation4], 0  ;;  %s484_s21 = smov [#allocation5]   ;;  %s390_s25 = scalar_lea.hbm %s596_s2, 768 }
   0x3   :  { %s31_s22 = sshll.u32 %s484_s21, 4  ;;  %p391_p0 = scmp.ne.s32.totalorder %s596_s2, %s390_s25  ;;  %s32_s22 = int_to_ptr.vmem [resolvable:$true] %s31_s22 }
   0x4   :  { %p394_p1 = scmp.lt.u32.totalorder %s390_s25, %s596_s2 }
   0x6   :  { %p396_p2 = pnand %p394_p1, %p391_p0 }
   0x8   :  { %399 = shalt.err (!%p396_p2)
}
   0x9   :  { %s400_s30 = scalar_lea.vmem %s32_s22, 768  ;;  %p405_p4 = scmp.lt.s32.totalorder %s32_s22, %s32_s22 }
   0xa   :  { %p401_p3 = scmp.ne.s32.totalorder %s32_s22, %s400_s30  ;;  %p406_p5 = scmp.lt.s32.totalorder %s400_s30, %s400_s30 }
   0xc   :  { %p407_p6 = por %p406_p5, %p405_p4 }
   0xe   :  { %p408_p7 = pnand %p407_p6, %p401_p3 }
  0x10   :  { %411 = shalt.err (!%p408_p7)
}
  0x11   :  { %s485_s7 = smov 128   ;;  %s486_s8 = smov 8  }
  0x12   :  { %37 = dma.hbm_to_vmem [thread:$0]  %s596_s2, 768, %s32_s22, [#allocation6], %s485_s7, %s485_s7, %s486_s8  }
  0x13   :  { %s487_s11 = smov [#allocation2]   ;;  %s488_s13 = smov [#allocation7]  }
  0x14   :  { %s20_s12 = sshll.u32 %s487_s11, 4  ;;  %s45_s14 = sshll.u32 %s488_s13, 4  ;;  %s21_s12 = int_to_ptr.vmem [resolvable:$true] %s20_s12  ;;  %s46_s14 = int_to_ptr.vmem [resolvable:$true] %s45_s14 }
  0x15   :  { %s412_s17 = scalar_lea.hbm %s594_s0, 32 }
  0x16   :  { %p413_p8 = scmp.ne.s32.totalorder %s594_s0, %s412_s17  ;;  %p416_p9 = scmp.lt.u32.totalorder %s412_s17, %s594_s0 }
  0x18   :  { %p418_p10 = pnand %p416_p9, %p413_p8 }
  0x1a   :  { %421 = shalt.err (!%p418_p10)
}
  0x1b   :  { %s422_s2 = scalar_lea.vmem %s21_s12, 32  ;;  %p427_p12 = scmp.lt.s32.totalorder %s21_s12, %s21_s12 }
  0x1c   :  { %p423_p11 = scmp.ne.s32.totalorder %s21_s12, %s422_s2  ;;  %p428_p13 = scmp.lt.s32.totalorder %s422_s2, %s422_s2 }
  0x1e   :  { %p429_p0 = por %p428_p13, %p427_p12 }
  0x20   :  { %p430_p1 = pnand %p429_p0, %p423_p11 }
  0x22   :  { %433 = shalt.err (!%p430_p1)
}
  0x23   :  { %23 = dma.hbm_to_vmem [thread:$0]  %s594_s0, 32, %s21_s12, [#allocation3]  }
  0x24   :  { %s434_s26 = scalar_lea.hbm %s598_s4, 512 }
  0x25   :  { %p435_p2 = scmp.ne.s32.totalorder %s598_s4, %s434_s26  ;;  %p438_p3 = scmp.lt.u32.totalorder %s434_s26, %s598_s4 }
  0x27   :  { %p440_p4 = pnand %p438_p3, %p435_p2 }
  0x29   :  { %443 = shalt.err (!%p440_p4)
}
  0x2a   :  { %s444_s9 = scalar_lea.vmem %s46_s14, 512  ;;  %p449_p6 = scmp.lt.s32.totalorder %s46_s14, %s46_s14 }
  0x2b   :  { %p445_p5 = scmp.ne.s32.totalorder %s46_s14, %s444_s9  ;;  %p450_p7 = scmp.lt.s32.totalorder %s444_s9, %s444_s9 }
  0x2d   :  { %p451_p8 = por %p450_p7, %p449_p6 }
  0x2f   :  { %p452_p9 = pnand %p451_p8, %p445_p5 }
  0x31   :  { %455 = shalt.err (!%p452_p9)
}
  0x32   :  { %51 = dma.hbm_to_vmem [thread:$0]  %s598_s4, 512, %s46_s14, [#allocation6], %s485_s7, %s485_s7, %s486_s8  }
  0x33   :  { %478 = dma.done.wait [#allocation3], 32  }
  0x34   :  { %479 = vsyncadd [#allocation3], 4294967264 }
  0x35   :  { %480 = dma.done.wait [#allocation6], 1280  }
  0x36   :  { %481 = vsyncadd [#allocation6], 4294966016  ;;  %v489_v0 = vmov 0.0|0.0   ;;  %vm490_vm0 = vmmov 0   ;;  %v491_v1 = vmov 0.0   ;;  %v65_v2 = vld [vmem:[#allocation5] sm:$0xff]  ;;  %v273_v38 = vlaneseq }
  0x37   :  { %352 = vmatprep.subr.bf16.mxu0 %v489_v0  ;;  %362 = vmatprep.subr.bf16.mxu1 %v489_v0  ;;  %v66_v3 = vld [vmem:[#allocation5 + $0x8] sm:$0xff]  ;;  %v67_v4 = vld [vmem:[#allocation5 + $0x10] sm:$0xff]  ;;  %v68_v6 = vld [vmem:[#allocation5 + $0x18] sm:$0xff]  ;;  %vm82_vm1 = vcmask 1040384   ;;  %vm492_vm2 = vmmov 1   ;;  %vm78_vm4 = vcmask 334848  }
  0x38   :  { %338 = vmatprep.mubr.msk.f32.mxu0 %vm490_vm0, %v491_v1  ;;  %349 = vmatprep.mubr.msk.f32.mxu1 %vm490_vm0, %v491_v1  ;;  %v353_v5 = vpack.c.bf16 %v66_v3, %v65_v2  ;;  %v356_v7 = vpack.c.bf16 %v68_v6, %v67_v4  ;;  %v69_v8 = vld [vmem:[#allocation5 + $0x20] sm:$0xff]  ;;  %v70_v9 = vld [vmem:[#allocation5 + $0x28] sm:$0x1]  ;;  %vm360_vm3 = vmpackc.low %vm82_vm1, %vm492_vm2  ;;  %s493_s8 = smov 64   ;;  %s494_s13 = smov 32   ;;  %vm200_vm5 = vcmask 261120  }
  0x39   :  { %v359_v10 = vpack.c.bf16 %v70_v9, %v69_v8  ;;  %v63_v11 = vld [vmem:[#allocation2] sm:$0x3]  ;;  %v186_v28 = vld [vmem:[#allocation7] sm:$0xff]  ;;  %v188_v30 = vld [vmem:[#allocation7 + $0x10] sm:$0xff]  ;;  %v274_v39 = vand.u32 127, %v273_v38  ;;  %vm277_vm7 = vcmask 1041408  }
  0x3a   :  { %354 = vmatpush3.bf16.msra.mxu0 %v353_v5  ;;  %v308_v12 = vld [vmem:[%s597_s3] ss:$0 sm:$0xff]  ;;  %v189_v32 = vld [vmem:[#allocation7 + $0x18] sm:$0xff]  ;;  %s495_s14 = smov [#allocation8]  }
  0x3b   :  { %355 = vmatprep.subr.bf16.mxu0 %v489_v0  ;;  %v311_v17 = vld [vmem:[%s595_s1] ss:$0 sm:$0xff]  ;;  %v366_v33 = vpack.c.bf16 %v189_v32, %v188_v30  ;;  %vm275_vm6 = vcmp.lt.s32.totalorder %v274_v39, 4  ;;  %s298_s15 = sshll.u32 %s495_s14, 4  ;;  %vm289_vm8 = vcmp.eq.s32.totalorder %v274_v39, 4  ;;  %s299_s15 = int_to_ptr.vmem [resolvable:$true] %s298_s15 }
  0x3c   :  { %v187_v29 = vld [vmem:[#allocation7 + $0x8] sm:$0xff]  ;;  %p461_p11 = scmp.lt.s32.totalorder %s299_s15, %s299_s15 }
  0x3d   :  { %v363_v31 = vpack.c.bf16 %v187_v29, %v186_v28  ;;  %v312_v40 = vld [vmem:[%s599_s5] ss:$0 sm:$0xff]  ;;  %s456_s5 = scalar_lea.vmem %s299_s15, 32 }
  0x3e   :  { %357 = vmatpush3.bf16.msra.mxu0 %v356_v7  ;;  %p457_p10 = scmp.ne.s32.totalorder %s299_s15, %s456_s5  ;;  %p462_p12 = scmp.lt.s32.totalorder %s456_s5, %s456_s5 }
  0x3f   :  { %358 = vmatprep.subr.bf16.mxu0 %v489_v0  ;;  %364 = vmatpush3.bf16.msra.mxu1 %v363_v31 }
  0x40   :  { %365 = vmatprep.subr.bf16.mxu1 %v489_v0  ;;  %p463_p13 = por %p462_p12, %p461_p11 }
  0x42   :  { %361 = vmatpush3.bf16.msk.msra.mxu0 %vm360_vm3, %v359_v10  ;;  %p464_p0 = pnand %p463_p13, %p457_p10 }
  0x43   :  { %367 = vmatpush3.bf16.msra.mxu1 %v366_v33 }
  0x45   :  { %339 = vmatmul.mubr.msk.f32.vlgmr.msra.gmra.mrb[0].mxu0 %vm78_vm4, %v63_v11 }
 0x118   :  { %v152_v13 = vpop.f32.mrb[0].mxu0 }
 0x119   :  { %v153_v14 = vadd.f32 %v308_v12, %v152_v13  ;;  %v340_v15 = vpop.f32.mrb[1].mxu0 }
 0x11b   :  { %380 = vtanh.f32 %v153_v14  ;;  %v156_v18 = vmul.f32 0.5, %v153_v14 }
 0x11d   :  { %382 = vtanh.f32 %v156_v18 }
 0x125   :  { %v381_v16 = vpop.eup %380 }
 0x126   :  { %171 = vrot.lane.b32.xlu0 %v381_v16, %s493_s8 }
 0x127   :  { %v383_v19 = vpop.eup %382 }
 0x128   :  { %v158_v20 = vadd.f32 1.0, %v383_v19 }
 0x12a   :  { %166 = vrot.lane.b32.xlu0 %v311_v17, %s494_s13  ;;  %v159_v21 = vmul.f32 0.5, %v158_v20 }
 0x198   :  { %v172_v22 = vpop.permute.xlu0 %171 }
 0x199   :  { %v174_v23 = vmul.f32 %v172_v22, %v159_v21 }
 0x19b   :  { %176 = vrot.lane.b32.xlu1 %v174_v23, %s494_s13 }
 0x19c   :  { %v167_v24 = vpop.permute.xlu0 %166 }
 0x19d   :  { %v169_v25 = vmul.f32 %v167_v24, %v159_v21 }
 0x20d   :  { %v177_v26 = vpop.permute.xlu1 %176 }
 0x20e   :  { %v179_v27 = vadd.f32 %v177_v26, %v169_v25 }
 0x210   :  { %384 = vtanh.f32 %v179_v27 }
 0x21a   :  { %v385_v34 = vpop.eup %384 }
 0x21b   :  { %182 = vrot.lane.b32.xlu1 %v385_v34, %s493_s8 }
 0x28d   :  { %v183_v35 = vpop.permute.xlu1 %182 }
 0x28e   :  { %v185_v36 = vmul.f32 %v183_v35, %v159_v21 }
 0x290   :  { %198 = vrot.lane.b32.xlu0 %v185_v36, %s494_s13 }
 0x302   :  { %v199_v37 = vpop.permute.xlu0 %198 }
 0x303   :  { %350 = vmatmul.mubr.msk.f32.vlgmr.msra.gmra.mrb[0].mxu1 %vm200_vm5, %v199_v37 }
 0x3d6   :  { %v269_v41 = vpop.f32.mrb[0].mxu1 }
 0x3d7   :  { %v270_v42 = vadd.f32 %v312_v40, %v269_v41  ;;  %v351_v43 = vpop.f32.mrb[1].mxu1 }
 0x3d9   :  { %v276_v44 = vsel %vm275_vm6, %v270_v42, -inf }
 0x3da   :  { %v278_v45 = vsel %vm277_vm7, %v276_v44, -inf }
 0x3db   :  { %279 = vmax.xlane.f32.xlu1 %v278_v45 }
 0x468   :  { %v280_v46 = vpop.xlane.xlu1 %279 }
 0x469   :  { %v281_v47 = vsub.f32 %v276_v44, %v280_v46 }
 0x46b   :  { %v282_v48 = vmul.f32 1.442695, %v281_v47 }
 0x46d   :  { %386 = vpow2.f32 %v282_v48 }
 0x477   :  { %v387_v49 = vpop.eup %386 }
 0x478   :  { %v284_v50 = vsel %vm277_vm7, %v387_v49, 0.0 }
 0x479   :  { %285 = vadd.xlane.f32.xlu0 %v284_v50 }
 0x506   :  { %v286_v51 = vpop.xlane.xlu0 %285 }
 0x507   :  { %388 = vrcp.f32 %v286_v51 }
 0x511   :  { %v389_v52 = vpop.eup %388 }
 0x512   :  { %v288_v53 = vmul.f32 %v389_v52, %v387_v49 }
 0x514   :  { %v290_v54 = vsel %vm289_vm8, %v270_v42, %v288_v53 }
 0x515   :  { %291 = vst [vmem:[#allocation8] sm:$0x3] %v290_v54 }
 0x516   :  { %467 = shalt.err (!%p464_p0)
}
 0x517   :  { %s468_s18 = scalar_lea.hbm %s600_s6, 32 }
 0x518   :  { %p469_p1 = scmp.ne.s32.totalorder %s600_s6, %s468_s18  ;;  %p472_p2 = scmp.lt.u32.totalorder %s468_s18, %s600_s6 }
 0x51a   :  { %p474_p3 = pnand %p472_p2, %p469_p1 }
 0x51c   :  { %477 = shalt.err (!%p474_p3)
}
 0x51d   :  { %301 = dma.vmem_to_hbm [thread:$0]  %s299_s15, 32, %s600_s6, [#allocation4]  }
 0x51e   :  { %482 = dma.done.wait [#allocation4], 32  }
 0x51f   :  { %483 = vsyncadd [#allocation4], 4294967264 }
 0x520   :  { %305 = vsyncpa [#allocation3], 1 }
 0x521   :  { %306 = vsyncpa [#allocation6], 1 }
 0x522   :  { %307 = vsyncpa [#allocation4], 1 }

</bundles_post_ra>
